<compile_context>
chip_gen: v7x
topology: tpu7x:2x2x1
jax: 0.10.0
libtpu: 0.0.40
codegen_flags: <defaults>
</compile_context>

<pallas_src>
import jax
import jax.numpy as jnp
from jax import lax
from jax.experimental import pallas as pl
from jax.experimental.pallas import tpu as pltpu


def rnn_chunk_kernel(xp_ref, h0_ref, whh_ref, out_ref, h_ref):
    """One time-chunk of the tanh RNN recurrence.

    xp_ref : (T, B, H) f32  precomputed x_t @ W_ih^T + b_ih + b_hh for this chunk
    h0_ref : (B, H)    f32  initial hidden state (consumed only at grid step 0)
    whh_ref: (H, H)    f32  W_hh^T (so each step is h @ whh_ref)
    out_ref: (T, B, H) f32  hidden states for this chunk
    h_ref  : (B, H)    f32  VMEM scratch carrying h across grid steps
    """
    T = out_ref.shape[0]

    @pl.when(pl.program_id(0) == 0)
    def _():
        h_ref[...] = h0_ref[...].astype(jnp.float32)

    def step(t, h):
        # Serial path: one small (B,H)@(H,H) matmul + tanh per timestep.
        h_new = jnp.tanh(
            xp_ref[t]
            + jnp.dot(h, whh_ref[...], preferred_element_type=jnp.float32)
        )
        out_ref[t] = h_new.astype(out_ref.dtype)
        return h_new

    # Bounded unroll keeps LLO scheduling visibility without vreg spills
    # when the chunk length grows.
    h_final = lax.fori_loop(0, T, step, h_ref[...], unroll=min(T, 8))
    h_ref[...] = h_final


def _pick_time_chunk(S, max_chunk=32):
    """Largest divisor of S that is <= max_chunk (keeps the grid exact)."""
    t = min(S, max_chunk)
    while S % t:
        t -= 1
    return t


def encoder_forward(tokens, state, emb_weight, w_ih, w_hh, b_ih, b_hh):
    """tokens: (S, B) int32; state: (1, B, H) f32. Returns (out (S,B,H), state (1,B,H))."""
    S, B = tokens.shape
    H = emb_weight.shape[1]

    # ---- Off the serial critical path (wrapper / XLA) ----
    # Fold the RNN input projection and both biases into the embedding table,
    # then gather.  Mathematically identical to emb-lookup followed by
    # x_t @ W_ih^T + b_ih + b_hh.
    projected_emb = emb_weight @ w_ih.T + (b_ih + b_hh)      # (vocab, H)
    xp = jnp.take(projected_emb, tokens, axis=0)             # (S, B, H) f32
    whh_t = w_hh.T                                           # (H, H)
    h0 = state[0]                                            # (B, H)

    T = _pick_time_chunk(S)

    out = pl.pallas_call(
        rnn_chunk_kernel,
        out_shape=jax.ShapeDtypeStruct((S, B, H), jnp.float32),
        grid_spec=pltpu.PrefetchScalarGridSpec(
            num_scalar_prefetch=0,
            grid=(S // T,),                                   # time chunks, serial
            in_specs=[
                pl.BlockSpec((T, B, H), lambda t: (t, 0, 0)),  # projected inputs
                pl.BlockSpec((B, H), lambda t: (0, 0)),        # h0
                pl.BlockSpec((H, H), lambda t: (0, 0)),        # W_hh^T
            ],
            out_specs=pl.BlockSpec((T, B, H), lambda t: (t, 0, 0)),
            scratch_shapes=[pltpu.VMEM((B, H), jnp.float32)],  # carried hidden state
        ),
        compiler_params=pltpu.CompilerParams(
            dimension_semantics=("arbitrary",),                # recurrence is serial
            vmem_limit_bytes=32 * 1024 * 1024,
        ),
    )(xp, h0, whh_t)

    # Final hidden state of a 1-layer unidirectional RNN == last output.
    h_last = out[-1:]                                          # (1, B, H)
    return out, h_last


def encoder_reference(tokens, state, emb_weight, w_ih, w_hh, b_ih, b_hh):
    """Pure-JAX reference matching nn.Embedding + nn.RNN(tanh) forward."""
    x_emb = jnp.take(emb_weight, tokens, axis=0)             # (S, B, H)
    h0 = state[0]                                            # (B, H)

    def step(h, x_t):
        h_new = jnp.tanh(x_t @ w_ih.T + b_ih + h @ w_hh.T + b_hh)
        return h_new, h_new

    h_last, outs = lax.scan(step, h0, x_emb)
    return outs, h_last[None]


if __name__ == "__main__":
    # Small shapes consistent with the module's forward.
    vocab_size = 40        # input_size
    hidden = 128           # hidden_size
    seq_len = 8
    batch = 8

    key = jax.random.PRNGKey(0)
    k_emb, k_wih, k_whh, k_bih, k_bhh, k_tok, k_h0 = jax.random.split(key, 7)

    # Deterministic parameter init (PyTorch-like uniform(-1/sqrt(H), 1/sqrt(H)) for RNN,
    # N(0,1) for embedding).
    bound = 1.0 / jnp.sqrt(jnp.float32(hidden))
    emb_weight = jax.random.normal(k_emb, (vocab_size, hidden), jnp.float32)
    w_ih = jax.random.uniform(k_wih, (hidden, hidden), jnp.float32, -bound, bound)
    w_hh = jax.random.uniform(k_whh, (hidden, hidden), jnp.float32, -bound, bound)
    b_ih = jax.random.uniform(k_bih, (hidden,), jnp.float32, -bound, bound)
    b_hh = jax.random.uniform(k_bhh, (hidden,), jnp.float32, -bound, bound)

    tokens = jax.random.randint(k_tok, (seq_len, batch), 0, vocab_size, jnp.int32)
    state = jax.random.normal(k_h0, (1, batch, hidden), jnp.float32)

    out, h_last = jax.jit(encoder_forward)(tokens, state, emb_weight,
                                           w_ih, w_hh, b_ih, b_hh)
    jax.block_until_ready((out, h_last))

    ref_out, ref_h = encoder_reference(tokens, state, emb_weight,
                                       w_ih, w_hh, b_ih, b_hh)

    assert out.shape == (seq_len, batch, hidden)
    assert h_last.shape == (1, batch, hidden)
    assert jnp.allclose(out, ref_out, atol=1e-5, rtol=1e-5)
    assert jnp.allclose(h_last, ref_h, atol=1e-5, rtol=1e-5)

    print("KERNEL_OK")
</pallas_src>

<mosaic_0001>
module attributes {stable_mosaic.version = 11 : i64} {
  func.func @rnn_chunk_kernel(%arg0: i32, %arg1: memref<8x8x128xf32, #tpu.memory_space<vmem>>, %arg2: memref<8x128xf32, #tpu.memory_space<vmem>>, %arg3: memref<128x128xf32, #tpu.memory_space<vmem>>, %arg4: memref<8x8x128xf32, #tpu.memory_space<vmem>>, %arg5: memref<8x128xf32, #tpu.memory_space<vmem>>) attributes {dimension_semantics = [#tpu.dimension_semantics<arbitrary>], iteration_bounds = array<i64: 1>, scalar_prefetch = 0 : i64, scratch_operands = 1 : i64, tpu.core_type = #tpu.core_type<tc>, window_params = [{transform_indices = @transform_0, window_bounds = array<i64: 8, 8, 128>}, {pipeline_mode = #tpu.pipeline_mode<synchronous>, transform_indices = @transform_1, window_bounds = array<i64: 8, 128>}, {pipeline_mode = #tpu.pipeline_mode<synchronous>, transform_indices = @transform_2, window_bounds = array<i64: 128, 128>}, {transform_indices = @transform_3, window_bounds = array<i64: 8, 8, 128>}]} {
    %c0_i32 = arith.constant 0 : i32
    %0 = arith.cmpi eq, %arg0, %c0_i32 : i32
    %1 = arith.extui %0 : i1 to i32
    %c0_i32_0 = arith.constant 0 : i32
    %2 = arith.cmpi ne, %1, %c0_i32_0 : i32
    scf.if %2 {
      %c0_60 = arith.constant 0 : index
      %c0_61 = arith.constant 0 : index
      %93 = vector.load %arg2[%c0_60, %c0_61] : memref<8x128xf32, #tpu.memory_space<vmem>>, vector<8x128xf32>
      %c0_62 = arith.constant 0 : index
      %c0_63 = arith.constant 0 : index
      %94 = vector.load %arg5[%c0_62, %c0_63] : memref<8x128xf32, #tpu.memory_space<vmem>>, vector<8x128xf32>
      tpu.vector_store %arg5[%c0_62, %c0_63], %93 {strides = array<i32>} : memref<8x128xf32, #tpu.memory_space<vmem>>, vector<8x128xf32>,
    } else {
    }
    %c0 = arith.constant 0 : index
    %c0_1 = arith.constant 0 : index
    %3 = vector.load %arg5[%c0, %c0_1] : memref<8x128xf32, #tpu.memory_space<vmem>>, vector<8x128xf32>
    %c0_i32_2 = arith.constant 0 : i32
    %4 = arith.index_cast %c0_i32_2 : i32 to index
    %c0_3 = arith.constant 0 : index
    %c0_4 = arith.constant 0 : index
    %5 = vector.load %arg1[%4, %c0_3, %c0_4] : memref<8x8x128xf32, #tpu.memory_space<vmem>>, vector<1x8x128xf32>
    %6 = vector.shape_cast %5 : vector<1x8x128xf32> to vector<8x128xf32>
    %c0_5 = arith.constant 0 : index
    %c0_6 = arith.constant 0 : index
    %7 = vector.load %arg3[%c0_5, %c0_6] : memref<128x128xf32, #tpu.memory_space<vmem>>, vector<128x128xf32>
    %cst = arith.constant dense<0.000000e+00> : vector<8x128xf32>
    %8 = tpu.matmul %3, %7, %cst {dimension_numbers = #tpu.dot_dimension_numbers<[1], [0], [0], [1], [0, 0, 1, 1], [], []>} : vector<8x128xf32>, vector<128x128xf32>, vector<8x128xf32> -> vector<8x128xf32>
    %9 = arith.addf %6, %8 : vector<8x128xf32>
    %10 = math.tanh %9 : vector<8x128xf32>
    %11 = arith.index_cast %c0_i32_2 : i32 to index
    %c0_7 = arith.constant 0 : index
    %c0_8 = arith.constant 0 : index
    %12 = vector.load %arg4[%11, %c0_7, %c0_8] : memref<8x8x128xf32, #tpu.memory_space<vmem>>, vector<1x8x128xf32>
    %13 = vector.shape_cast %12 : vector<1x8x128xf32> to vector<8x128xf32>
    %14 = vector.shape_cast %10 : vector<8x128xf32> to vector<1x8x128xf32>
    tpu.vector_store %arg4[%11, %c0_7, %c0_8], %14 {strides = array<i32>} : memref<8x8x128xf32, #tpu.memory_space<vmem>>, vector<1x8x128xf32>,
    %c1_i32 = arith.constant 1 : i32
    %15 = arith.index_cast %c1_i32 : i32 to index
    %c0_9 = arith.constant 0 : index
    %c0_10 = arith.constant 0 : index
    %16 = vector.load %arg1[%15, %c0_9, %c0_10] : memref<8x8x128xf32, #tpu.memory_space<vmem>>, vector<1x8x128xf32>
    %17 = vector.shape_cast %16 : vector<1x8x128xf32> to vector<8x128xf32>
    %c0_11 = arith.constant 0 : index
    %c0_12 = arith.constant 0 : index
    %18 = vector.load %arg3[%c0_11, %c0_12] : memref<128x128xf32, #tpu.memory_space<vmem>>, vector<128x128xf32>
    %cst_13 = arith.constant dense<0.000000e+00> : vector<8x128xf32>
    %19 = tpu.matmul %10, %18, %cst_13 {dimension_numbers = #tpu.dot_dimension_numbers<[1], [0], [0], [1], [0, 0, 1, 1], [], []>} : vector<8x128xf32>, vector<128x128xf32>, vector<8x128xf32> -> vector<8x128xf32>
    %20 = arith.addf %17, %19 : vector<8x128xf32>
    %21 = math.tanh %20 : vector<8x128xf32>
    %22 = arith.index_cast %c1_i32 : i32 to index
    %c0_14 = arith.constant 0 : index
    %c0_15 = arith.constant 0 : index
    %23 = vector.load %arg4[%22, %c0_14, %c0_15] : memref<8x8x128xf32, #tpu.memory_space<vmem>>, vector<1x8x128xf32>
    %24 = vector.shape_cast %23 : vector<1x8x128xf32> to vector<8x128xf32>
    %25 = vector.shape_cast %21 : vector<8x128xf32> to vector<1x8x128xf32>
    tpu.vector_store %arg4[%22, %c0_14, %c0_15], %25 {strides = array<i32>} : memref<8x8x128xf32, #tpu.memory_space<vmem>>, vector<1x8x128xf32>,
    %c2_i32 = arith.constant 2 : i32
    %26 = arith.index_cast %c2_i32 : i32 to index
    %c0_16 = arith.constant 0 : index
    %c0_17 = arith.constant 0 : index
    %27 = vector.load %arg1[%26, %c0_16, %c0_17] : memref<8x8x128xf32, #tpu.memory_space<vmem>>, vector<1x8x128xf32>
    %28 = vector.shape_cast %27 : vector<1x8x128xf32> to vector<8x128xf32>
    %c0_18 = arith.constant 0 : index
    %c0_19 = arith.constant 0 : index
    %29 = vector.load %arg3[%c0_18, %c0_19] : memref<128x128xf32, #tpu.memory_space<vmem>>, vector<128x128xf32>
    %cst_20 = arith.constant dense<0.000000e+00> : vector<8x128xf32>
    %30 = tpu.matmul %21, %29, %cst_20 {dimension_numbers = #tpu.dot_dimension_numbers<[1], [0], [0], [1], [0, 0, 1, 1], [], []>} : vector<8x128xf32>, vector<128x128xf32>, vector<8x128xf32> -> vector<8x128xf32>
    %31 = arith.addf %28, %30 : vector<8x128xf32>
    %32 = math.tanh %31 : vector<8x128xf32>
    %33 = arith.index_cast %c2_i32 : i32 to index
    %c0_21 = arith.constant 0 : index
    %c0_22 = arith.constant 0 : index
    %34 = vector.load %arg4[%33, %c0_21, %c0_22] : memref<8x8x128xf32, #tpu.memory_space<vmem>>, vector<1x8x128xf32>
    %35 = vector.shape_cast %34 : vector<1x8x128xf32> to vector<8x128xf32>
    %36 = vector.shape_cast %32 : vector<8x128xf32> to vector<1x8x128xf32>
    tpu.vector_store %arg4[%33, %c0_21, %c0_22], %36 {strides = array<i32>} : memref<8x8x128xf32, #tpu.memory_space<vmem>>, vector<1x8x128xf32>,
    %c3_i32 = arith.constant 3 : i32
    %37 = arith.index_cast %c3_i32 : i32 to index
    %c0_23 = arith.constant 0 : index
    %c0_24 = arith.constant 0 : index
    %38 = vector.load %arg1[%37, %c0_23, %c0_24] : memref<8x8x128xf32, #tpu.memory_space<vmem>>, vector<1x8x128xf32>
    %39 = vector.shape_cast %38 : vector<1x8x128xf32> to vector<8x128xf32>
    %c0_25 = arith.constant 0 : index
    %c0_26 = arith.constant 0 : index
    %40 = vector.load %arg3[%c0_25, %c0_26] : memref<128x128xf32, #tpu.memory_space<vmem>>, vector<128x128xf32>
    %cst_27 = arith.constant dense<0.000000e+00> : vector<8x128xf32>
    %41 = tpu.matmul %32, %40, %cst_27 {dimension_numbers = #tpu.dot_dimension_numbers<[1], [0], [0], [1], [0, 0, 1, 1], [], []>} : vector<8x128xf32>, vector<128x128xf32>, vector<8x128xf32> -> vector<8x128xf32>
    %42 = arith.addf %39, %41 : vector<8x128xf32>
    %43 = math.tanh %42 : vector<8x128xf32>
    %44 = arith.index_cast %c3_i32 : i32 to index
    %c0_28 = arith.constant 0 : index
    %c0_29 = arith.constant 0 : index
    %45 = vector.load %arg4[%44, %c0_28, %c0_29] : memref<8x8x128xf32, #tpu.memory_space<vmem>>, vector<1x8x128xf32>
    %46 = vector.shape_cast %45 : vector<1x8x128xf32> to vector<8x128xf32>
    %47 = vector.shape_cast %43 : vector<8x128xf32> to vector<1x8x128xf32>
    tpu.vector_store %arg4[%44, %c0_28, %c0_29], %47 {strides = array<i32>} : memref<8x8x128xf32, #tpu.memory_space<vmem>>, vector<1x8x128xf32>,
    %c4_i32 = arith.constant 4 : i32
    %48 = arith.index_cast %c4_i32 : i32 to index
    %c0_30 = arith.constant 0 : index
    %c0_31 = arith.constant 0 : index
    %49 = vector.load %arg1[%48, %c0_30, %c0_31] : memref<8x8x128xf32, #tpu.memory_space<vmem>>, vector<1x8x128xf32>
    %50 = vector.shape_cast %49 : vector<1x8x128xf32> to vector<8x128xf32>
    %c0_32 = arith.constant 0 : index
    %c0_33 = arith.constant 0 : index
    %51 = vector.load %arg3[%c0_32, %c0_33] : memref<128x128xf32, #tpu.memory_space<vmem>>, vector<128x128xf32>
    %cst_34 = arith.constant dense<0.000000e+00> : vector<8x128xf32>
    %52 = tpu.matmul %43, %51, %cst_34 {dimension_numbers = #tpu.dot_dimension_numbers<[1], [0], [0], [1], [0, 0, 1, 1], [], []>} : vector<8x128xf32>, vector<128x128xf32>, vector<8x128xf32> -> vector<8x128xf32>
    %53 = arith.addf %50, %52 : vector<8x128xf32>
    %54 = math.tanh %53 : vector<8x128xf32>
    %55 = arith.index_cast %c4_i32 : i32 to index
    %c0_35 = arith.constant 0 : index
    %c0_36 = arith.constant 0 : index
    %56 = vector.load %arg4[%55, %c0_35, %c0_36] : memref<8x8x128xf32, #tpu.memory_space<vmem>>, vector<1x8x128xf32>
    %57 = vector.shape_cast %56 : vector<1x8x128xf32> to vector<8x128xf32>
    %58 = vector.shape_cast %54 : vector<8x128xf32> to vector<1x8x128xf32>
    tpu.vector_store %arg4[%55, %c0_35, %c0_36], %58 {strides = array<i32>} : memref<8x8x128xf32, #tpu.memory_space<vmem>>, vector<1x8x128xf32>,
    %c5_i32 = arith.constant 5 : i32
    %59 = arith.index_cast %c5_i32 : i32 to index
    %c0_37 = arith.constant 0 : index
    %c0_38 = arith.constant 0 : index
    %60 = vector.load %arg1[%59, %c0_37, %c0_38] : memref<8x8x128xf32, #tpu.memory_space<vmem>>, vector<1x8x128xf32>
    %61 = vector.shape_cast %60 : vector<1x8x128xf32> to vector<8x128xf32>
    %c0_39 = arith.constant 0 : index
    %c0_40 = arith.constant 0 : index
    %62 = vector.load %arg3[%c0_39, %c0_40] : memref<128x128xf32, #tpu.memory_space<vmem>>, vector<128x128xf32>
    %cst_41 = arith.constant dense<0.000000e+00> : vector<8x128xf32>
    %63 = tpu.matmul %54, %62, %cst_41 {dimension_numbers = #tpu.dot_dimension_numbers<[1], [0], [0], [1], [0, 0, 1, 1], [], []>} : vector<8x128xf32>, vector<128x128xf32>, vector<8x128xf32> -> vector<8x128xf32>
    %64 = arith.addf %61, %63 : vector<8x128xf32>
    %65 = math.tanh %64 : vector<8x128xf32>
    %66 = arith.index_cast %c5_i32 : i32 to index
    %c0_42 = arith.constant 0 : index
    %c0_43 = arith.constant 0 : index
    %67 = vector.load %arg4[%66, %c0_42, %c0_43] : memref<8x8x128xf32, #tpu.memory_space<vmem>>, vector<1x8x128xf32>
    %68 = vector.shape_cast %67 : vector<1x8x128xf32> to vector<8x128xf32>
    %69 = vector.shape_cast %65 : vector<8x128xf32> to vector<1x8x128xf32>
    tpu.vector_store %arg4[%66, %c0_42, %c0_43], %69 {strides = array<i32>} : memref<8x8x128xf32, #tpu.memory_space<vmem>>, vector<1x8x128xf32>,
    %c6_i32 = arith.constant 6 : i32
    %70 = arith.index_cast %c6_i32 : i32 to index
    %c0_44 = arith.constant 0 : index
    %c0_45 = arith.constant 0 : index
    %71 = vector.load %arg1[%70, %c0_44, %c0_45] : memref<8x8x128xf32, #tpu.memory_space<vmem>>, vector<1x8x128xf32>
    %72 = vector.shape_cast %71 : vector<1x8x128xf32> to vector<8x128xf32>
    %c0_46 = arith.constant 0 : index
    %c0_47 = arith.constant 0 : index
    %73 = vector.load %arg3[%c0_46, %c0_47] : memref<128x128xf32, #tpu.memory_space<vmem>>, vector<128x128xf32>
    %cst_48 = arith.constant dense<0.000000e+00> : vector<8x128xf32>
    %74 = tpu.matmul %65, %73, %cst_48 {dimension_numbers = #tpu.dot_dimension_numbers<[1], [0], [0], [1], [0, 0, 1, 1], [], []>} : vector<8x128xf32>, vector<128x128xf32>, vector<8x128xf32> -> vector<8x128xf32>
    %75 = arith.addf %72, %74 : vector<8x128xf32>
    %76 = math.tanh %75 : vector<8x128xf32>
    %77 = arith.index_cast %c6_i32 : i32 to index
    %c0_49 = arith.constant 0 : index
    %c0_50 = arith.constant 0 : index
    %78 = vector.load %arg4[%77, %c0_49, %c0_50] : memref<8x8x128xf32, #tpu.memory_space<vmem>>, vector<1x8x128xf32>
    %79 = vector.shape_cast %78 : vector<1x8x128xf32> to vector<8x128xf32>
    %80 = vector.shape_cast %76 : vector<8x128xf32> to vector<1x8x128xf32>
    tpu.vector_store %arg4[%77, %c0_49, %c0_50], %80 {strides = array<i32>} : memref<8x8x128xf32, #tpu.memory_space<vmem>>, vector<1x8x128xf32>,
    %c7_i32 = arith.constant 7 : i32
    %81 = arith.index_cast %c7_i32 : i32 to index
    %c0_51 = arith.constant 0 : index
    %c0_52 = arith.constant 0 : index
    %82 = vector.load %arg1[%81, %c0_51, %c0_52] : memref<8x8x128xf32, #tpu.memory_space<vmem>>, vector<1x8x128xf32>
    %83 = vector.shape_cast %82 : vector<1x8x128xf32> to vector<8x128xf32>
    %c0_53 = arith.constant 0 : index
    %c0_54 = arith.constant 0 : index
    %84 = vector.load %arg3[%c0_53, %c0_54] : memref<128x128xf32, #tpu.memory_space<vmem>>, vector<128x128xf32>
    %cst_55 = arith.constant dense<0.000000e+00> : vector<8x128xf32>
    %85 = tpu.matmul %76, %84, %cst_55 {dimension_numbers = #tpu.dot_dimension_numbers<[1], [0], [0], [1], [0, 0, 1, 1], [], []>} : vector<8x128xf32>, vector<128x128xf32>, vector<8x128xf32> -> vector<8x128xf32>
    %86 = arith.addf %83, %85 : vector<8x128xf32>
    %87 = math.tanh %86 : vector<8x128xf32>
    %88 = arith.index_cast %c7_i32 : i32 to index
    %c0_56 = arith.constant 0 : index
    %c0_57 = arith.constant 0 : index
    %89 = vector.load %arg4[%88, %c0_56, %c0_57] : memref<8x8x128xf32, #tpu.memory_space<vmem>>, vector<1x8x128xf32>
    %90 = vector.shape_cast %89 : vector<1x8x128xf32> to vector<8x128xf32>
    %91 = vector.shape_cast %87 : vector<8x128xf32> to vector<1x8x128xf32>
    tpu.vector_store %arg4[%88, %c0_56, %c0_57], %91 {strides = array<i32>} : memref<8x8x128xf32, #tpu.memory_space<vmem>>, vector<1x8x128xf32>,
    %c8_i32 = arith.constant 8 : i32
    %c0_58 = arith.constant 0 : index
    %c0_59 = arith.constant 0 : index
    %92 = vector.load %arg5[%c0_58, %c0_59] : memref<8x128xf32, #tpu.memory_space<vmem>>, vector<8x128xf32>
    tpu.vector_store %arg5[%c0_58, %c0_59], %87 {strides = array<i32>} : memref<8x128xf32, #tpu.memory_space<vmem>>, vector<8x128xf32>,
    return
  }
  func.func @transform_0(%arg0: i32) -> (i32, i32, i32) {
    %c0_i32 = arith.constant 0 : i32
    %c0_i32_0 = arith.constant 0 : i32
    %c0_i32_1 = arith.constant 0 : i32
    return %arg0, %c0_i32, %c0_i32_0 : i32, i32, i32
  }
  func.func @transform_1(%arg0: i32) -> (i32, i32) {
    %c0_i32 = arith.constant 0 : i32
    %c0_i32_0 = arith.constant 0 : i32
    %c0_i32_1 = arith.constant 0 : i32
    return %c0_i32, %c0_i32_0 : i32, i32
  }
  func.func @transform_2(%arg0: i32) -> (i32, i32) {
    %c0_i32 = arith.constant 0 : i32
    %c0_i32_0 = arith.constant 0 : i32
    %c0_i32_1 = arith.constant 0 : i32
    return %c0_i32, %c0_i32_0 : i32, i32
  }
  func.func @transform_3(%arg0: i32) -> (i32, i32, i32) {
    %c0_i32 = arith.constant 0 : i32
    %c0_i32_0 = arith.constant 0 : i32
    %c0_i32_1 = arith.constant 0 : i32
    return %arg0, %c0_i32, %c0_i32_0 : i32, i32, i32
  }
}

</mosaic_0001>

<bundles_post_ra>
// kernel: encoder_forward.1
= control target key start
LH: loop header
LB: loop body
LE: loop exit
PB: predicated region body
PF: predicated region fallthrough
CT: control target
= control target key end

     0   :  { %v1401_v0 = vmov 0.0|0.0   ;;  %vm1402_vm0 = vmmov 0   ;;  %v1403_v4 = vmov 0.0   ;;  %s1683_s2 = inlined_call_operand.vmem [shape: f32[128,128], index: 2, kind: input, shape index: {}]   ;;  %s1684_s1 = inlined_call_operand.vmem [shape: f32[8,128], index: 1, kind: input, shape index: {}]   ;;  %s1685_s0 = inlined_call_operand.vmem [shape: f32[8,8,128], index: 0, kind: input, shape index: {}]   ;;  %s1686_s3 = inlined_call_operand.vmem [shape: f32[8,8,128], index: 3, kind: output, shape index: {}]  }
   0x1   :  { %1190 = vmatprep.subr.bf16.mxu0 %v1401_v0  ;;  %v22_v1 = vld [vmem:[%s1683_s2] sm:$0xff]  ;;  %v23_v2 = vld [vmem:[%s1683_s2 + $0x8] sm:$0xff]  ;;  %v24_v3 = vld [vmem:[%s1683_s2 + $0x10] sm:$0xff]  ;;  %942 = vmatprep.mubr.msk.f32.mxu0 %vm1402_vm0, %v1403_v4 }
   0x2   :  { %v1436_v5 = vpack.c.bf16 %v23_v2, %v22_v1  ;;  %v25_v6 = vld [vmem:[%s1683_s2 + $0x18] sm:$0xff]  ;;  %1214 = vmatprep.subr.bf16.mxu1 %v1401_v0  ;;  %977 = vmatprep.mubr.msk.f32.mxu1 %vm1402_vm0, %v1403_v4  ;;  %v26_v8 = vld [vmem:[%s1683_s2 + $0x20] sm:$0xff]  ;;  %v27_v9 = vld [vmem:[%s1683_s2 + $0x28] sm:$0xff] }
   0x3   :  { %v1445_v7 = vpack.c.bf16 %v25_v6, %v24_v3  ;;  %v1457_v10 = vpack.c.bf16 %v27_v9, %v26_v8  ;;  %v28_v11 = vld [vmem:[%s1683_s2 + $0x30] sm:$0xff]  ;;  %v29_v12 = vld [vmem:[%s1683_s2 + $0x38] sm:$0xff]  ;;  %v30_v14 = vld [vmem:[%s1683_s2 + $0x40] sm:$0xff] }
   0x4   :  { %1192 = vmatpush3.bf16.msra.mxu0 %v1436_v5  ;;  %1216 = vmatpush3.bf16.msra.mxu1 %v1436_v5  ;;  %v1469_v13 = vpack.c.bf16 %v29_v12, %v28_v11  ;;  %v31_v15 = vld [vmem:[%s1683_s2 + $0x48] sm:$0xff]  ;;  %v32_v17 = vld [vmem:[%s1683_s2 + $0x50] sm:$0xff]  ;;  %v33_v18 = vld [vmem:[%s1683_s2 + $0x58] sm:$0xff] }
   0x5   :  { %1193 = vmatprep.subr.bf16.mxu0 %v1401_v0  ;;  %1217 = vmatprep.subr.bf16.mxu1 %v1401_v0  ;;  %v1481_v16 = vpack.c.bf16 %v31_v15, %v30_v14  ;;  %v1493_v19 = vpack.c.bf16 %v33_v18, %v32_v17  ;;  %v34_v20 = vld [vmem:[%s1683_s2 + $0x60] sm:$0xff]  ;;  %v35_v21 = vld [vmem:[%s1683_s2 + $0x68] sm:$0xff]  ;;  %v36_v23 = vld [vmem:[%s1683_s2 + $0x70] sm:$0xff] }
   0x6   :  { %v1505_v22 = vpack.c.bf16 %v35_v21, %v34_v20  ;;  %v37_v24 = vld [vmem:[%s1683_s2 + $0x78] sm:$0xff]  ;;  %v18_v26 = vld [vmem:[%s1684_s1] sm:$0xff]  ;;  %v760_v32 = vld [vmem:[%s1685_s0 + $0x8] sm:$0xff] }
   0x7   :  { %v1517_v25 = vpack.c.bf16 %v37_v24, %v36_v23  ;;  %v21_v27 = vld [vmem:[%s1685_s0] sm:$0xff]  ;;  %v762_v37 = vld [vmem:[%s1685_s0 + $0x10] sm:$0xff]  ;;  %v764_v42 = vld [vmem:[%s1685_s0 + $0x18] sm:$0xff] }
   0x8   :  { %1195 = vmatpush3.bf16.msra.mxu0 %v1445_v7  ;;  %1219 = vmatpush3.bf16.msra.mxu1 %v1445_v7  ;;  %v766_v47 = vld [vmem:[%s1685_s0 + $0x20] sm:$0xff]  ;;  %v768_v52 = vld [vmem:[%s1685_s0 + $0x28] sm:$0xff]  ;;  %v770_v57 = vld [vmem:[%s1685_s0 + $0x30] sm:$0xff] }
   0x9   :  { %1196 = vmatprep.subr.bf16.mxu0 %v1401_v0  ;;  %1220 = vmatprep.subr.bf16.mxu1 %v1401_v0  ;;  %v772_v62 = vld [vmem:[%s1685_s0 + $0x38] sm:$0xff] }
   0xc   :  { %1198 = vmatpush3.bf16.msra.mxu0 %v1457_v10  ;;  %1222 = vmatpush3.bf16.msra.mxu1 %v1457_v10 }
   0xd   :  { %1199 = vmatprep.subr.bf16.mxu0 %v1401_v0  ;;  %1223 = vmatprep.subr.bf16.mxu1 %v1401_v0 }
  0x10   :  { %1201 = vmatpush3.bf16.msra.mxu0 %v1469_v13  ;;  %1225 = vmatpush3.bf16.msra.mxu1 %v1469_v13 }
  0x11   :  { %1202 = vmatprep.subr.bf16.mxu0 %v1401_v0  ;;  %1226 = vmatprep.subr.bf16.mxu1 %v1401_v0 }
  0x14   :  { %1204 = vmatpush3.bf16.msra.mxu0 %v1481_v16  ;;  %1228 = vmatpush3.bf16.msra.mxu1 %v1481_v16 }
  0x15   :  { %1205 = vmatprep.subr.bf16.mxu0 %v1401_v0  ;;  %1229 = vmatprep.subr.bf16.mxu1 %v1401_v0 }
  0x18   :  { %1207 = vmatpush3.bf16.msra.mxu0 %v1493_v19  ;;  %1231 = vmatpush3.bf16.msra.mxu1 %v1493_v19 }
  0x19   :  { %1208 = vmatprep.subr.bf16.mxu0 %v1401_v0  ;;  %1232 = vmatprep.subr.bf16.mxu1 %v1401_v0 }
  0x1c   :  { %1210 = vmatpush3.bf16.msra.mxu0 %v1505_v22  ;;  %1234 = vmatpush3.bf16.msra.mxu1 %v1505_v22 }
  0x1d   :  { %1211 = vmatprep.subr.bf16.mxu0 %v1401_v0  ;;  %1235 = vmatprep.subr.bf16.mxu1 %v1401_v0 }
  0x20   :  { %1213 = vmatpush3.bf16.msra.mxu0 %v1517_v25  ;;  %1237 = vmatpush3.bf16.msra.mxu1 %v1517_v25 }
  0x21   :  { %1238 = vmatprep.subr.bf16.mxu0 %v1401_v0  ;;  %1262 = vmatprep.subr.bf16.mxu1 %v1401_v0 }
  0x23   :  { %943 = vmatmul.mubr.f32.vlgmr.msra.gmra.mrb[0].mxu0 %v18_v26 }
  0x24   :  { %1240 = vmatpush3.bf16.msra.mxu0 %v1436_v5  ;;  %1012 = vmatprep.mubr.msk.f32.mxu0 %vm1402_vm0, %v1403_v4 }
  0x25   :  { %1241 = vmatprep.subr.bf16.mxu0 %v1401_v0 }
  0x28   :  { %1243 = vmatpush3.bf16.msra.mxu0 %v1445_v7 }
  0x29   :  { %1244 = vmatprep.subr.bf16.mxu0 %v1401_v0 }
  0x2c   :  { %1246 = vmatpush3.bf16.msra.mxu0 %v1457_v10 }
  0x2d   :  { %1247 = vmatprep.subr.bf16.mxu0 %v1401_v0 }
  0x30   :  { %1249 = vmatpush3.bf16.msra.mxu0 %v1469_v13 }
  0x31   :  { %1250 = vmatprep.subr.bf16.mxu0 %v1401_v0 }
  0x34   :  { %1252 = vmatpush3.bf16.msra.mxu0 %v1481_v16 }
  0x35   :  { %1253 = vmatprep.subr.bf16.mxu0 %v1401_v0 }
  0x38   :  { %1255 = vmatpush3.bf16.msra.mxu0 %v1493_v19 }
  0x39   :  { %1256 = vmatprep.subr.bf16.mxu0 %v1401_v0 }
  0x3c   :  { %1258 = vmatpush3.bf16.msra.mxu0 %v1505_v22 }
  0x3d   :  { %1259 = vmatprep.subr.bf16.mxu0 %v1401_v0 }
  0x40   :  { %1261 = vmatpush3.bf16.msra.mxu0 %v1517_v25 }
  0x41   :  { %1286 = vmatprep.subr.bf16.mxu0 %v1401_v0 }
  0xf6   :  { %v104_v28 = vpop.f32.mrb[0].mxu0 }
  0xf7   :  { %v108_v29 = vadd.f32 %v104_v28, %v21_v27  ;;  %v944_v30 = vpop.f32.mrb[1].mxu0 }
  0xf9   :  { %1385 = vtanh.f32 %v108_v29 }
 0x103   :  { %v1386_v31 = vpop.eup %1385 }
 0x104   :  { %110 = vst [vmem:[%s1686_s3] sm:$0xff] %v1386_v31  ;;  %978 = vmatmul.mubr.f32.vlgmr.msra.gmra.mrb[0].mxu1 %v1386_v31 }
 0x105   :  { %1264 = vmatpush3.bf16.msra.mxu1 %v1436_v5  ;;  %1047 = vmatprep.mubr.msk.f32.mxu1 %vm1402_vm0, %v1403_v4 }
 0x106   :  { %1265 = vmatprep.subr.bf16.mxu1 %v1401_v0 }
 0x109   :  { %1267 = vmatpush3.bf16.msra.mxu1 %v1445_v7 }
 0x10a   :  { %1268 = vmatprep.subr.bf16.mxu1 %v1401_v0 }
 0x10d   :  { %1270 = vmatpush3.bf16.msra.mxu1 %v1457_v10 }
 0x10e   :  { %1271 = vmatprep.subr.bf16.mxu1 %v1401_v0 }
 0x111   :  { %1273 = vmatpush3.bf16.msra.mxu1 %v1469_v13 }
 0x112   :  { %1274 = vmatprep.subr.bf16.mxu1 %v1401_v0 }
 0x115   :  { %1276 = vmatpush3.bf16.msra.mxu1 %v1481_v16 }
 0x116   :  { %1277 = vmatprep.subr.bf16.mxu1 %v1401_v0 }
 0x119   :  { %1279 = vmatpush3.bf16.msra.mxu1 %v1493_v19 }
 0x11a   :  { %1280 = vmatprep.subr.bf16.mxu1 %v1401_v0 }
 0x11d   :  { %1282 = vmatpush3.bf16.msra.mxu1 %v1505_v22 }
 0x11e   :  { %1283 = vmatprep.subr.bf16.mxu1 %v1401_v0 }
 0x121   :  { %1285 = vmatpush3.bf16.msra.mxu1 %v1517_v25 }
 0x122   :  { %1310 = vmatprep.subr.bf16.mxu1 %v1401_v0 }
 0x1d7   :  { %v195_v33 = vpop.f32.mrb[0].mxu1 }
 0x1d8   :  { %v199_v34 = vadd.f32 %v760_v32, %v195_v33  ;;  %v979_v35 = vpop.f32.mrb[1].mxu1 }
 0x1da   :  { %1387 = vtanh.f32 %v199_v34 }
 0x1e4   :  { %v1388_v36 = vpop.eup %1387 }
 0x1e5   :  { %761 = vst [vmem:[%s1686_s3 + $0x8] sm:$0xff] %v1388_v36  ;;  %1013 = vmatmul.mubr.f32.vlgmr.msra.gmra.mrb[2].mxu0 %v1388_v36 }
 0x1e6   :  { %1288 = vmatpush3.bf16.msra.mxu0 %v1436_v5  ;;  %1082 = vmatprep.mubr.msk.f32.mxu0 %vm1402_vm0, %v1403_v4 }
 0x1e7   :  { %1289 = vmatprep.subr.bf16.mxu0 %v1401_v0 }
 0x1ea   :  { %1291 = vmatpush3.bf16.msra.mxu0 %v1445_v7 }
 0x1eb   :  { %1292 = vmatprep.subr.bf16.mxu0 %v1401_v0 }
 0x1ee   :  { %1294 = vmatpush3.bf16.msra.mxu0 %v1457_v10 }
 0x1ef   :  { %1295 = vmatprep.subr.bf16.mxu0 %v1401_v0 }
 0x1f2   :  { %1297 = vmatpush3.bf16.msra.mxu0 %v1469_v13 }
 0x1f3   :  { %1298 = vmatprep.subr.bf16.mxu0 %v1401_v0 }
 0x1f6   :  { %1300 = vmatpush3.bf16.msra.mxu0 %v1481_v16 }
 0x1f7   :  { %1301 = vmatprep.subr.bf16.mxu0 %v1401_v0 }
 0x1fa   :  { %1303 = vmatpush3.bf16.msra.mxu0 %v1493_v19 }
 0x1fb   :  { %1304 = vmatprep.subr.bf16.mxu0 %v1401_v0 }
 0x1fe   :  { %1306 = vmatpush3.bf16.msra.mxu0 %v1505_v22 }
 0x1ff   :  { %1307 = vmatprep.subr.bf16.mxu0 %v1401_v0 }
 0x202   :  { %1309 = vmatpush3.bf16.msra.mxu0 %v1517_v25 }
 0x203   :  { %1334 = vmatprep.subr.bf16.mxu0 %v1401_v0 }
 0x2b8   :  { %v287_v38 = vpop.f32.mrb[2].mxu0 }
 0x2b9   :  { %v291_v39 = vadd.f32 %v762_v37, %v287_v38  ;;  %v1014_v40 = vpop.f32.mrb[3].mxu0 }
 0x2bb   :  { %1389 = vtanh.f32 %v291_v39 }
 0x2c5   :  { %v1390_v41 = vpop.eup %1389 }
 0x2c6   :  { %763 = vst [vmem:[%s1686_s3 + $0x10] sm:$0xff] %v1390_v41  ;;  %1048 = vmatmul.mubr.f32.vlgmr.msra.gmra.mrb[2].mxu1 %v1390_v41 }
 0x2c7   :  { %1312 = vmatpush3.bf16.msra.mxu1 %v1436_v5  ;;  %1117 = vmatprep.mubr.msk.f32.mxu1 %vm1402_vm0, %v1403_v4 }
 0x2c8   :  { %1313 = vmatprep.subr.bf16.mxu1 %v1401_v0 }
 0x2cb   :  { %1315 = vmatpush3.bf16.msra.mxu1 %v1445_v7 }
 0x2cc   :  { %1316 = vmatprep.subr.bf16.mxu1 %v1401_v0 }
 0x2cf   :  { %1318 = vmatpush3.bf16.msra.mxu1 %v1457_v10 }
 0x2d0   :  { %1319 = vmatprep.subr.bf16.mxu1 %v1401_v0 }
 0x2d3   :  { %1321 = vmatpush3.bf16.msra.mxu1 %v1469_v13 }
 0x2d4   :  { %1322 = vmatprep.subr.bf16.mxu1 %v1401_v0 }
 0x2d7   :  { %1324 = vmatpush3.bf16.msra.mxu1 %v1481_v16 }
 0x2d8   :  { %1325 = vmatprep.subr.bf16.mxu1 %v1401_v0 }
 0x2db   :  { %1327 = vmatpush3.bf16.msra.mxu1 %v1493_v19 }
 0x2dc   :  { %1328 = vmatprep.subr.bf16.mxu1 %v1401_v0 }
 0x2df   :  { %1330 = vmatpush3.bf16.msra.mxu1 %v1505_v22 }
 0x2e0   :  { %1331 = vmatprep.subr.bf16.mxu1 %v1401_v0 }
 0x2e3   :  { %1333 = vmatpush3.bf16.msra.mxu1 %v1517_v25 }
 0x2e4   :  { %1358 = vmatprep.subr.bf16.mxu1 %v1401_v0 }
 0x399   :  { %v379_v43 = vpop.f32.mrb[2].mxu1 }
 0x39a   :  { %v383_v44 = vadd.f32 %v764_v42, %v379_v43  ;;  %v1049_v45 = vpop.f32.mrb[3].mxu1 }
 0x39c   :  { %1391 = vtanh.f32 %v383_v44 }
 0x3a6   :  { %v1392_v46 = vpop.eup %1391 }
 0x3a7   :  { %765 = vst [vmem:[%s1686_s3 + $0x18] sm:$0xff] %v1392_v46  ;;  %1083 = vmatmul.mubr.f32.vlgmr.msra.gmra.mrb[4].mxu0 %v1392_v46 }
 0x3a8   :  { %1336 = vmatpush3.bf16.msra.mxu0 %v1436_v5  ;;  %1152 = vmatprep.mubr.msk.f32.mxu0 %vm1402_vm0, %v1403_v4 }
 0x3a9   :  { %1337 = vmatprep.subr.bf16.mxu0 %v1401_v0 }
 0x3ac   :  { %1339 = vmatpush3.bf16.msra.mxu0 %v1445_v7 }
 0x3ad   :  { %1340 = vmatprep.subr.bf16.mxu0 %v1401_v0 }
 0x3b0   :  { %1342 = vmatpush3.bf16.msra.mxu0 %v1457_v10 }
 0x3b1   :  { %1343 = vmatprep.subr.bf16.mxu0 %v1401_v0 }
 0x3b4   :  { %1345 = vmatpush3.bf16.msra.mxu0 %v1469_v13 }
 0x3b5   :  { %1346 = vmatprep.subr.bf16.mxu0 %v1401_v0 }
 0x3b8   :  { %1348 = vmatpush3.bf16.msra.mxu0 %v1481_v16 }
 0x3b9   :  { %1349 = vmatprep.subr.bf16.mxu0 %v1401_v0 }
 0x3bc   :  { %1351 = vmatpush3.bf16.msra.mxu0 %v1493_v19 }
 0x3bd   :  { %1352 = vmatprep.subr.bf16.mxu0 %v1401_v0 }
 0x3c0   :  { %1354 = vmatpush3.bf16.msra.mxu0 %v1505_v22 }
 0x3c1   :  { %1355 = vmatprep.subr.bf16.mxu0 %v1401_v0 }
 0x3c4   :  { %1357 = vmatpush3.bf16.msra.mxu0 %v1517_v25 }
 0x47a   :  { %v471_v48 = vpop.f32.mrb[4].mxu0 }
 0x47b   :  { %v475_v49 = vadd.f32 %v766_v47, %v471_v48  ;;  %v1084_v50 = vpop.f32.mrb[5].mxu0 }
 0x47d   :  { %1393 = vtanh.f32 %v475_v49 }
 0x487   :  { %v1394_v51 = vpop.eup %1393 }
 0x488   :  { %767 = vst [vmem:[%s1686_s3 + $0x20] sm:$0xff] %v1394_v51  ;;  %1118 = vmatmul.mubr.f32.vlgmr.msra.gmra.mrb[4].mxu1 %v1394_v51 }
 0x489   :  { %1360 = vmatpush3.bf16.msra.mxu1 %v1436_v5  ;;  %1187 = vmatprep.mubr.msk.f32.mxu1 %vm1402_vm0, %v1403_v4 }
 0x48a   :  { %1361 = vmatprep.subr.bf16.mxu1 %v1401_v0 }
 0x48d   :  { %1363 = vmatpush3.bf16.msra.mxu1 %v1445_v7 }
 0x48e   :  { %1364 = vmatprep.subr.bf16.mxu1 %v1401_v0 }
 0x491   :  { %1366 = vmatpush3.bf16.msra.mxu1 %v1457_v10 }
 0x492   :  { %1367 = vmatprep.subr.bf16.mxu1 %v1401_v0 }
 0x495   :  { %1369 = vmatpush3.bf16.msra.mxu1 %v1469_v13 }
 0x496   :  { %1370 = vmatprep.subr.bf16.mxu1 %v1401_v0 }
 0x499   :  { %1372 = vmatpush3.bf16.msra.mxu1 %v1481_v16 }
 0x49a   :  { %1373 = vmatprep.subr.bf16.mxu1 %v1401_v0 }
 0x49d   :  { %1375 = vmatpush3.bf16.msra.mxu1 %v1493_v19 }
 0x49e   :  { %1376 = vmatprep.subr.bf16.mxu1 %v1401_v0 }
 0x4a1   :  { %1378 = vmatpush3.bf16.msra.mxu1 %v1505_v22 }
 0x4a2   :  { %1379 = vmatprep.subr.bf16.mxu1 %v1401_v0 }
 0x4a5   :  { %1381 = vmatpush3.bf16.msra.mxu1 %v1517_v25 }
 0x55b   :  { %v563_v53 = vpop.f32.mrb[4].mxu1 }
 0x55c   :  { %v567_v54 = vadd.f32 %v768_v52, %v563_v53  ;;  %v1119_v55 = vpop.f32.mrb[5].mxu1 }
 0x55e   :  { %1395 = vtanh.f32 %v567_v54 }
 0x568   :  { %v1396_v56 = vpop.eup %1395 }
 0x569   :  { %769 = vst [vmem:[%s1686_s3 + $0x28] sm:$0xff] %v1396_v56  ;;  %1153 = vmatmul.mubr.f32.vlgmr.msra.gmra.mrb[6].mxu0 %v1396_v56 }
 0x63c   :  { %v655_v58 = vpop.f32.mrb[6].mxu0 }
 0x63d   :  { %v659_v59 = vadd.f32 %v770_v57, %v655_v58  ;;  %v1154_v60 = vpop.f32.mrb[7].mxu0 }
 0x63f   :  { %1397 = vtanh.f32 %v659_v59 }
 0x649   :  { %v1398_v61 = vpop.eup %1397 }
 0x64a   :  { %771 = vst [vmem:[%s1686_s3 + $0x30] sm:$0xff] %v1398_v61  ;;  %1188 = vmatmul.mubr.f32.vlgmr.msra.gmra.mrb[6].mxu1 %v1398_v61 }
 0x71d   :  { %v747_v63 = vpop.f32.mrb[6].mxu1 }
 0x71e   :  { %v751_v0 = vadd.f32 %v772_v62, %v747_v63  ;;  %v1189_v1 = vpop.f32.mrb[7].mxu1 }
 0x720   :  { %1399 = vtanh.f32 %v751_v0 }
 0x72a   :  { %v1400_v2 = vpop.eup %1399 }
 0x72b   :  { %773 = vst [vmem:[%s1686_s3 + $0x38] sm:$0xff] %v1400_v2 }

</bundles_post_ra>
